<compile_context>
chip_gen: v7x
topology: tpu7x:2x2x1
jax: 0.10.0
libtpu: 0.0.40
codegen_flags: <defaults>
</compile_context>

<pallas_src>
import jax
import jax.numpy as jnp
from jax.experimental import pallas as pl
from jax.experimental.pallas import tpu as pltpu


_LAYER_DIMS = (
    ("stage1", 4, 12),
    ("stage2", 12, 12),
    ("stage3", 12, 12),
    ("stage4", 12, 2),
)
_PAD = 128      # lane-padded hidden width for the layer-2..4 weight blocks
_IN_PAD = 8     # lanes carried for the input (4 state + 1 bias lane + 3 zero)
_OUT_PAD = 8    # lanes written for the output (2 logits + 6 zero)


def _round_up(x, m):
    return ((x + m - 1) // m) * m


def _cdiv(a, b):
    return -(-a // b)


def _mlp_kernel(x_ref, w1_ref, w_ref, o_ref):
    """Whole 4-layer MLP for one batch tile.

    x_ref : [Bt, 8]  f32  (lanes 0..3 = state, lane 4 = 1.0 bias lane, rest 0)
    w1_ref: [8, 128] bf16 augmented stage1 weights (bias row + ones passthrough)
    w_ref : [3, 128, 128] bf16 augmented stage2/3/4 weights
    o_ref : [Bt, 8]  f32  (lanes 0..1 = logits, rest 0)
    """
    # Cast only at the dot inputs; ReLU + accumulation stay f32.
    x = x_ref[...].astype(jnp.bfloat16)
    h = jnp.dot(x, w1_ref[...], preferred_element_type=jnp.float32)
    h = jnp.maximum(h, 0.0)
    h = jnp.dot(h.astype(jnp.bfloat16), w_ref[0], preferred_element_type=jnp.float32)
    h = jnp.maximum(h, 0.0)
    h = jnp.dot(h.astype(jnp.bfloat16), w_ref[1], preferred_element_type=jnp.float32)
    h = jnp.maximum(h, 0.0)
    out = jnp.dot(h.astype(jnp.bfloat16), w_ref[2], preferred_element_type=jnp.float32)
    o_ref[...] = out[:, :_OUT_PAD]


def pack_params(params, dtype=jnp.bfloat16):
    """Pack per-layer (w[in,out], b[out]) into augmented bf16 weight blocks.

    Block layout per layer:
      block[:d_in, :d_out] = W
      block[d_in,  :d_out] = b        (bias row, multiplied by the ones lane)
      block[d_in,  d_out]  = 1.0      (passes the ones lane onward; ReLU(1)=1;
                                       omitted for the final layer)

    Returns:
      w1_packed: [8, 128]       stage1 block
      w_packed : [3, 128, 128]  stage2/3/4 blocks
    """
    n_layers = len(_LAYER_DIMS)

    name, d_in, d_out = _LAYER_DIMS[0]
    w, b = params[name]
    w1 = jnp.zeros((_IN_PAD, _PAD), jnp.float32)
    w1 = w1.at[:d_in, :d_out].set(jnp.asarray(w, jnp.float32).reshape(d_in, d_out))
    w1 = w1.at[d_in, :d_out].set(jnp.asarray(b, jnp.float32).reshape(d_out))
    w1 = w1.at[d_in, d_out].set(1.0)  # ones-lane passthrough

    blocks = []
    for idx in range(1, n_layers):
        name, d_in, d_out = _LAYER_DIMS[idx]
        w, b = params[name]
        blk = jnp.zeros((_PAD, _PAD), jnp.float32)
        blk = blk.at[:d_in, :d_out].set(jnp.asarray(w, jnp.float32).reshape(d_in, d_out))
        blk = blk.at[d_in, :d_out].set(jnp.asarray(b, jnp.float32).reshape(d_out))
        if idx < n_layers - 1:
            blk = blk.at[d_in, d_out].set(1.0)
        blocks.append(blk)

    return w1.astype(dtype), jnp.stack(blocks).astype(dtype)


def net_forward(state, w1_packed, w_packed, *, block_b=1024):
    """state: [B, 4] float32.  w1_packed/w_packed from pack_params."""
    B, d_in = state.shape
    assert d_in == _LAYER_DIMS[0][1]
    d_out = _LAYER_DIMS[-1][2]

    # Batch tile: ceil(B / n_steps) rounded to 8 sublanes -> padding waste < 8*n_steps.
    n_steps = max(1, _cdiv(B, block_b))
    Bt = _round_up(_cdiv(B, n_steps), 8)
    B_pad = n_steps * Bt

    # Narrow 8-lane input with the folded-bias ones lane; single concat + pad.
    x = jnp.concatenate(
        [state.astype(jnp.float32),
         jnp.ones((B, 1), jnp.float32),
         jnp.zeros((B, _IN_PAD - d_in - 1), jnp.float32)],
        axis=1)
    if B_pad != B:
        x = jnp.pad(x, ((0, B_pad - B), (0, 0)))   # padded rows: ones lane = 0 -> output 0

    weight_elems = _IN_PAD * _PAD + 3 * _PAD * _PAD
    flops = 2 * B_pad * (_IN_PAD * _PAD + 3 * _PAD * _PAD)
    bytes_accessed = (B_pad * _IN_PAD * 4          # state tiles
                      + B_pad * _OUT_PAD * 4       # output tiles
                      + weight_elems * 2)          # bf16 weight blocks (fetched once)

    out = pl.pallas_call(
        _mlp_kernel,
        out_shape=jax.ShapeDtypeStruct((B_pad, _OUT_PAD), jnp.float32),
        grid_spec=pltpu.PrefetchScalarGridSpec(
            num_scalar_prefetch=0,
            grid=(B_pad // Bt,),
            in_specs=[
                pl.BlockSpec((Bt, _IN_PAD), lambda i: (i, 0)),            # state tiles
                pl.BlockSpec((_IN_PAD, _PAD), lambda i: (0, 0)),          # stage1 block (VMEM-resident)
                pl.BlockSpec((3, _PAD, _PAD), lambda i: (0, 0, 0)),       # stage2..4 slab (VMEM-resident)
            ],
            out_specs=pl.BlockSpec((Bt, _OUT_PAD), lambda i: (i, 0)),
        ),
        compiler_params=pltpu.CompilerParams(
            dimension_semantics=("parallel",),
        ),
        cost_estimate=pl.CostEstimate(
            flops=flops, transcendentals=0, bytes_accessed=bytes_accessed),
    )(x, w1_packed, w_packed)

    return out[:B, :d_out]


def init_params(key):
    """Deterministic init; weights stored as [in, out], biases as [out]."""
    params = {}
    for name, d_in, d_out in _LAYER_DIMS:
        key, kw, kb = jax.random.split(key, 3)
        bound = 1.0 / (d_in ** 0.5)  # PyTorch nn.Linear default init range
        w = jax.random.uniform(kw, (d_in, d_out), jnp.float32, -bound, bound)
        b = jax.random.uniform(kb, (d_out,), jnp.float32, -bound, bound)
        params[name] = (w, b)
    return params


def _reference_forward(state, params):
    """Pure-f32 reference of the intended module semantics."""
    h = state.astype(jnp.float32)
    for name in ("stage1", "stage2", "stage3"):
        w, b = params[name]
        h = jnp.maximum(h @ w + b, 0.0)
    w, b = params["stage4"]
    return h @ w + b


if __name__ == "__main__":
    key = jax.random.PRNGKey(0)
    kx, kx2, kp = jax.random.split(key, 3)

    params = init_params(kp)
    w1_packed, w_packed = pack_params(params)

    # Small batch of CartPole states.
    B = 8
    state = jax.random.normal(kx, (B, 4), dtype=jnp.float32)
    out = net_forward(state, w1_packed, w_packed)
    jax.block_until_ready(out)
    ref = _reference_forward(state, params)
    assert out.shape == (B, 2)
    # Weights/activations feed the MXU in bf16 -> loosened tolerance vs f32 reference.
    assert jnp.allclose(out, ref, atol=5e-2, rtol=5e-2)

    # Non-multiple-of-8 batch exercises the padding path.
    B2 = 5
    state2 = jax.random.normal(kx2, (B2, 4), dtype=jnp.float32)
    out2 = net_forward(state2, w1_packed, w_packed)
    jax.block_until_ready(out2)
    ref2 = _reference_forward(state2, params)
    assert out2.shape == (B2, 2)
    assert jnp.allclose(out2, ref2, atol=5e-2, rtol=5e-2)

    print("KERNEL_OK")
</pallas_src>

<mosaic_0001>
module attributes {stable_mosaic.version = 11 : i64} {
  func.func @_mlp_kernel(%arg0: i32, %arg1: memref<8x8xf32, #tpu.memory_space<vmem>>, %arg2: memref<8x128xbf16, #tpu.memory_space<vmem>>, %arg3: memref<3x128x128xbf16, #tpu.memory_space<vmem>>, %arg4: memref<8x8xf32, #tpu.memory_space<vmem>>) attributes {dimension_semantics = [#tpu.dimension_semantics<parallel>], iteration_bounds = array<i64: 1>, scalar_prefetch = 0 : i64, scratch_operands = 0 : i64, tpu.core_type = #tpu.core_type<tc>, window_params = [{transform_indices = @transform_0, window_bounds = array<i64: 8, 8>}, {pipeline_mode = #tpu.pipeline_mode<synchronous>, transform_indices = @transform_1, window_bounds = array<i64: 8, 128>}, {pipeline_mode = #tpu.pipeline_mode<synchronous>, transform_indices = @transform_2, window_bounds = array<i64: 3, 128, 128>}, {transform_indices = @transform_3, window_bounds = array<i64: 8, 8>}]} {
    %c0 = arith.constant 0 : index
    %c0_0 = arith.constant 0 : index
    %0 = vector.load %arg1[%c0, %c0_0] : memref<8x8xf32, #tpu.memory_space<vmem>>, vector<8x8xf32>
    %1 = arith.truncf %0 : vector<8x8xf32> to vector<8x8xbf16>
    %c0_1 = arith.constant 0 : index
    %c0_2 = arith.constant 0 : index
    %2 = vector.load %arg2[%c0_1, %c0_2] : memref<8x128xbf16, #tpu.memory_space<vmem>>, vector<8x128xbf16>
    %cst = arith.constant dense<0.000000e+00> : vector<8x128xf32>
    %3 = tpu.matmul %1, %2, %cst {dimension_numbers = #tpu.dot_dimension_numbers<[1], [0], [0], [1], [0, 0, 1, 1], [], []>} : vector<8x8xbf16>, vector<8x128xbf16>, vector<8x128xf32> -> vector<8x128xf32>
    %cst_3 = arith.constant 0.000000e+00 : f32
    %4 = vector.broadcast %cst_3 : f32 to vector<8x128xf32>
    %5 = arith.maximumf %3, %4 : vector<8x128xf32>
    %6 = arith.truncf %5 : vector<8x128xf32> to vector<8x128xbf16>
    %c0_4 = arith.constant 0 : index
    %c0_5 = arith.constant 0 : index
    %c0_6 = arith.constant 0 : index
    %7 = vector.load %arg3[%c0_4, %c0_5, %c0_6] : memref<3x128x128xbf16, #tpu.memory_space<vmem>>, vector<1x128x128xbf16>
    %8 = vector.shape_cast %7 : vector<1x128x128xbf16> to vector<128x128xbf16>
    %cst_7 = arith.constant dense<0.000000e+00> : vector<8x128xf32>
    %9 = tpu.matmul %6, %8, %cst_7 {dimension_numbers = #tpu.dot_dimension_numbers<[1], [0], [0], [1], [0, 0, 1, 1], [], []>} : vector<8x128xbf16>, vector<128x128xbf16>, vector<8x128xf32> -> vector<8x128xf32>
    %cst_8 = arith.constant 0.000000e+00 : f32
    %10 = vector.broadcast %cst_8 : f32 to vector<8x128xf32>
    %11 = arith.maximumf %9, %10 : vector<8x128xf32>
    %12 = arith.truncf %11 : vector<8x128xf32> to vector<8x128xbf16>
    %c1 = arith.constant 1 : index
    %c0_9 = arith.constant 0 : index
    %c0_10 = arith.constant 0 : index
    %13 = vector.load %arg3[%c1, %c0_9, %c0_10] : memref<3x128x128xbf16, #tpu.memory_space<vmem>>, vector<1x128x128xbf16>
    %14 = vector.shape_cast %13 : vector<1x128x128xbf16> to vector<128x128xbf16>
    %cst_11 = arith.constant dense<0.000000e+00> : vector<8x128xf32>
    %15 = tpu.matmul %12, %14, %cst_11 {dimension_numbers = #tpu.dot_dimension_numbers<[1], [0], [0], [1], [0, 0, 1, 1], [], []>} : vector<8x128xbf16>, vector<128x128xbf16>, vector<8x128xf32> -> vector<8x128xf32>
    %cst_12 = arith.constant 0.000000e+00 : f32
    %16 = vector.broadcast %cst_12 : f32 to vector<8x128xf32>
    %17 = arith.maximumf %15, %16 : vector<8x128xf32>
    %18 = arith.truncf %17 : vector<8x128xf32> to vector<8x128xbf16>
    %c2 = arith.constant 2 : index
    %c0_13 = arith.constant 0 : index
    %c0_14 = arith.constant 0 : index
    %19 = vector.load %arg3[%c2, %c0_13, %c0_14] : memref<3x128x128xbf16, #tpu.memory_space<vmem>>, vector<1x128x128xbf16>
    %20 = vector.shape_cast %19 : vector<1x128x128xbf16> to vector<128x128xbf16>
    %cst_15 = arith.constant dense<0.000000e+00> : vector<8x128xf32>
    %21 = tpu.matmul %18, %20, %cst_15 {dimension_numbers = #tpu.dot_dimension_numbers<[1], [0], [0], [1], [0, 0, 1, 1], [], []>} : vector<8x128xbf16>, vector<128x128xbf16>, vector<8x128xf32> -> vector<8x128xf32>
    %22 = vector.extract_strided_slice %21 {offsets = [0, 0], sizes = [8, 8], strides = [1, 1]} : vector<8x128xf32> to vector<8x8xf32>
    %c0_16 = arith.constant 0 : index
    %c0_17 = arith.constant 0 : index
    %23 = vector.load %arg4[%c0_16, %c0_17] : memref<8x8xf32, #tpu.memory_space<vmem>>, vector<8x8xf32>
    tpu.vector_store %arg4[%c0_16, %c0_17], %22 {strides = array<i32>} : memref<8x8xf32, #tpu.memory_space<vmem>>, vector<8x8xf32>,
    return
  }
  func.func @transform_0(%arg0: i32) -> (i32, i32) {
    %c0_i32 = arith.constant 0 : i32
    %c0_i32_0 = arith.constant 0 : i32
    return %arg0, %c0_i32 : i32, i32
  }
  func.func @transform_1(%arg0: i32) -> (i32, i32) {
    %c0_i32 = arith.constant 0 : i32
    %c0_i32_0 = arith.constant 0 : i32
    %c0_i32_1 = arith.constant 0 : i32
    return %c0_i32, %c0_i32_0 : i32, i32
  }
  func.func @transform_2(%arg0: i32) -> (i32, i32, i32) {
    %c0_i32 = arith.constant 0 : i32
    %c0_i32_0 = arith.constant 0 : i32
    %c0_i32_1 = arith.constant 0 : i32
    %c0_i32_2 = arith.constant 0 : i32
    return %c0_i32, %c0_i32_0, %c0_i32_1 : i32, i32, i32
  }
  func.func @transform_3(%arg0: i32) -> (i32, i32) {
    %c0_i32 = arith.constant 0 : i32
    %c0_i32_0 = arith.constant 0 : i32
    return %arg0, %c0_i32 : i32, i32
  }
}

</mosaic_0001>

<bundles_post_ra>
// kernel: tpu_custom_call.1
= control target key start
LH: loop header
LB: loop body
LE: loop exit
PB: predicated region body
PF: predicated region fallthrough
CT: control target
= control target key end

     0   :  { %8 = vsyncpa [#allocation3], 0  ;;  %s798_s0 = inlined_call_operand.hbm [shape: f32[8,8], index: 0, kind: input, shape index: {}]   ;;  %s799_s1 = inlined_call_operand.hbm [shape: bf16[8,128], index: 1, kind: input, shape index: {}]   ;;  %s800_s2 = inlined_call_operand.hbm [shape: bf16[3,128,128], index: 2, kind: input, shape index: {}]   ;;  %s801_s3 = inlined_call_operand.hbm [shape: f32[8,8], index: 3, kind: output, shape index: {}]  }
   0x1   :  { %9 = vsyncpa [#allocation6], 0 }
   0x2   :  { %10 = vsyncpa [#allocation4], 0  ;;  %s687_s12 = smov [#allocation5]   ;;  %s688_s14 = smov [#allocation2]  }
   0x3   :  { %s27_s13 = sshll.u32 %s687_s12, 4  ;;  %s17_s15 = sshll.u32 %s688_s14, 4  ;;  %s28_s13 = int_to_ptr.vmem [resolvable:$true] %s27_s13  ;;  %s18_s15 = int_to_ptr.vmem [resolvable:$true] %s17_s15 }
   0x4   :  { %s593_s18 = scalar_lea.hbm %s799_s1, 64 }
   0x5   :  { %p594_p0 = scmp.ne.s32.totalorder %s799_s1, %s593_s18  ;;  %p597_p1 = scmp.lt.u32.totalorder %s593_s18, %s799_s1 }
   0x7   :  { %p599_p2 = pnand %p597_p1, %p594_p0 }
   0x9   :  { %602 = shalt.err (!%p599_p2)
}
   0xa   :  { %s603_s23 = scalar_lea.vmem %s28_s13, 64  ;;  %p608_p4 = scmp.lt.s32.totalorder %s28_s13, %s28_s13 }
   0xb   :  { %p604_p3 = scmp.ne.s32.totalorder %s28_s13, %s603_s23  ;;  %p609_p5 = scmp.lt.s32.totalorder %s603_s23, %s603_s23 }
   0xd   :  { %p610_p6 = por %p609_p5, %p608_p4 }
   0xf   :  { %p611_p7 = pnand %p610_p6, %p604_p3 }
  0x11   :  { %614 = shalt.err (!%p611_p7)
}
  0x12   :  { %30 = dma.hbm_to_vmem [thread:$0]  %s799_s1, 64, %s28_s13, [#allocation6]  }
  0x13   :  { %s615_s28 = scalar_lea.hbm %s798_s0, 128 }
  0x14   :  { %p616_p8 = scmp.ne.s32.totalorder %s798_s0, %s615_s28  ;;  %p619_p9 = scmp.lt.u32.totalorder %s615_s28, %s798_s0 }
  0x16   :  { %p621_p10 = pnand %p619_p9, %p616_p8 }
  0x18   :  { %624 = shalt.err (!%p621_p10)
}
  0x19   :  { %s625_s6 = scalar_lea.vmem %s18_s15, 128  ;;  %p630_p12 = scmp.lt.s32.totalorder %s18_s15, %s18_s15 }
  0x1a   :  { %p626_p11 = scmp.ne.s32.totalorder %s18_s15, %s625_s6  ;;  %p631_p13 = scmp.lt.s32.totalorder %s625_s6, %s625_s6 }
  0x1c   :  { %p632_p0 = por %p631_p13, %p630_p12 }
  0x1e   :  { %p633_p1 = pnand %p632_p0, %p626_p11 }
  0x20   :  { %636 = shalt.err (!%p633_p1)
}
  0x21   :  { %20 = dma.hbm_to_vmem [thread:$0]  %s798_s0, 128, %s18_s15, [#allocation3]  }
  0x22   :  { %s689_s8 = smov [#allocation7]   ;;  %s637_s12 = scalar_lea.hbm %s800_s2, 3072 }
  0x23   :  { %s36_s9 = sshll.u32 %s689_s8, 4  ;;  %p638_p2 = scmp.ne.s32.totalorder %s800_s2, %s637_s12  ;;  %s37_s9 = int_to_ptr.vmem [resolvable:$true] %s36_s9 }
  0x24   :  { %p641_p3 = scmp.lt.u32.totalorder %s637_s12, %s800_s2 }
  0x26   :  { %p643_p4 = pnand %p641_p3, %p638_p2 }
  0x28   :  { %646 = shalt.err (!%p643_p4)
}
  0x29   :  { %s647_s18 = scalar_lea.vmem %s37_s9, 3072  ;;  %p652_p6 = scmp.lt.s32.totalorder %s37_s9, %s37_s9 }
  0x2a   :  { %p648_p5 = scmp.ne.s32.totalorder %s37_s9, %s647_s18  ;;  %p653_p7 = scmp.lt.s32.totalorder %s647_s18, %s647_s18 }
  0x2c   :  { %p654_p8 = por %p653_p7, %p652_p6 }
  0x2e   :  { %p655_p9 = pnand %p654_p8, %p648_p5 }
  0x30   :  { %658 = shalt.err (!%p655_p9)
}
  0x31   :  { %s690_s0 = smov 64   ;;  %s691_s15 = smov 4  }
  0x32   :  { %42 = dma.hbm_to_vmem [thread:$0]  %s800_s2, 3072, %s37_s9, [#allocation6], %s690_s0, %s690_s0, %s691_s15  }
  0x33   :  { %681 = dma.done.wait [#allocation3], 128  }
  0x34   :  { %682 = vsyncadd [#allocation3], 4294967168 }
  0x35   :  { %683 = dma.done.wait [#allocation6], 3136  }
  0x36   :  { %684 = vsyncadd [#allocation6], 4294964160  ;;  %v692_v0 = vmov 0.0   ;;  %vm693_vm0 = vmmov 0   ;;  %vm60_vm1 = vcmask 1043456   ;;  %v53_v2 = vld [vmem:[#allocation2] sm:$0xff] }
  0x37   :  { %495 = vmatprep.subr.bf16.mxu0 %v692_v0  ;;  %497 = vmatprep.mubr.msk.bf16.mxu0 %vm693_vm0, %v692_v0  ;;  %v55_v1 = vld [vmem:[#allocation5] sm:$0xf]  ;;  %v54_v4 = vpack.c.bf16 %v53_v2, %v53_v2  ;;  %v569_v5 = vld [vmem:[#allocation7] sm:$0xff]   ;;  %vm56_vm2 = vcmask 64512   ;;  %v570_v6 = vld [vmem:[#allocation7 + $0x8] sm:$0xff]   ;;  %s694_s2 = smov [#allocation8]  }
  0x38   :  { %501 = vmatprep.subr.bf16.mxu1 %v692_v0  ;;  %517 = vmatprep.mubr.msk.bf16.mxu1 %vm693_vm0, %v692_v0  ;;  %v62_v3 = vsel %vm60_vm1, %v55_v1, 0  ;;  %v571_v7 = vld [vmem:[#allocation7 + $0x10] sm:$0xff]   ;;  %v572_v8 = vld [vmem:[#allocation7 + $0x18] sm:$0xff]   ;;  %v573_v9 = vld [vmem:[#allocation7 + $0x20] sm:$0xff]   ;;  %s431_s21 = sshll.u32 %s694_s2, 4  ;;  %s432_s21 = int_to_ptr.vmem [resolvable:$true] %s431_s21 }
  0x39   :  { %496 = vmatpush3.bf16.msra.mxu0 %v62_v3  ;;  %502 = vmatpush3.bf16.msra.mxu1 %v569_v5  ;;  %v574_v10 = vld [vmem:[#allocation7 + $0x28] sm:$0xff]   ;;  %v575_v11 = vld [vmem:[#allocation7 + $0x30] sm:$0xff]   ;;  %v576_v12 = vld [vmem:[#allocation7 + $0x38] sm:$0xff]   ;;  %s659_s22 = scalar_lea.vmem %s432_s21, 128  ;;  %p664_p11 = scmp.lt.s32.totalorder %s432_s21, %s432_s21 }
  0x3a   :  { %521 = vmatprep.subr.bf16.mxu0 %v692_v0  ;;  %503 = vmatprep.subr.bf16.mxu1 %v692_v0  ;;  %v577_v13 = vld [vmem:[#allocation7 + $0x40] sm:$0xff]   ;;  %v578_v14 = vld [vmem:[#allocation7 + $0x48] sm:$0xff]   ;;  %v579_v15 = vld [vmem:[#allocation7 + $0x50] sm:$0xff]   ;;  %p660_p10 = scmp.ne.s32.totalorder %s432_s21, %s659_s22  ;;  %p665_p12 = scmp.lt.s32.totalorder %s659_s22, %s659_s22 }
  0x3b   :  { %v580_v16 = vld [vmem:[#allocation7 + $0x58] sm:$0xff]   ;;  %v581_v17 = vld [vmem:[#allocation7 + $0x60] sm:$0xff]   ;;  %v582_v18 = vld [vmem:[#allocation7 + $0x68] sm:$0xff]  }
  0x3c   :  { %498 = vmatmul.mubr.msk.bf16.vlgmr.msra.gmra.mrb[0].mxu0 %vm56_vm2, %v54_v4  ;;  %v583_v19 = vld [vmem:[#allocation7 + $0x70] sm:$0xff]   ;;  %v584_v26 = vld [vmem:[#allocation7 + $0x78] sm:$0xff]   ;;  %v585_v27 = vld [vmem:[#allocation7 + $0x80] sm:$0xff]   ;;  %p666_p13 = por %p665_p12, %p664_p11 }
  0x3d   :  { %537 = vmatprep.mubr.msk.bf16.mxu0 %vm693_vm0, %v692_v0  ;;  %504 = vmatpush3.bf16.msra.mxu1 %v570_v6  ;;  %v586_v28 = vld [vmem:[#allocation7 + $0x88] sm:$0xff]   ;;  %v587_v29 = vld [vmem:[#allocation7 + $0x90] sm:$0xff]   ;;  %v588_v30 = vld [vmem:[#allocation7 + $0x98] sm:$0xff]  }
  0x3e   :  { %505 = vmatprep.subr.bf16.mxu1 %v692_v0  ;;  %522 = vmatpush3.bf16.msra.mxu0 %v577_v13  ;;  %v589_v31 = vld [vmem:[#allocation7 + $0xa0] sm:$0xff]   ;;  %v590_v32 = vld [vmem:[#allocation7 + $0xa8] sm:$0xff]   ;;  %v591_v33 = vld [vmem:[#allocation7 + $0xb0] sm:$0xff]   ;;  %p667_p0 = pnand %p666_p13, %p660_p10 }
  0x3f   :  { %523 = vmatprep.subr.bf16.mxu0 %v692_v0  ;;  %v592_v40 = vld [vmem:[#allocation7 + $0xb8] sm:$0xff]  }
  0x41   :  { %506 = vmatpush3.bf16.msra.mxu1 %v571_v7 }
  0x42   :  { %507 = vmatprep.subr.bf16.mxu1 %v692_v0  ;;  %524 = vmatpush3.bf16.msra.mxu0 %v578_v14 }
  0x43   :  { %525 = vmatprep.subr.bf16.mxu0 %v692_v0 }
  0x45   :  { %508 = vmatpush3.bf16.msra.mxu1 %v572_v8 }
  0x46   :  { %509 = vmatprep.subr.bf16.mxu1 %v692_v0  ;;  %526 = vmatpush3.bf16.msra.mxu0 %v579_v15 }
  0x47   :  { %527 = vmatprep.subr.bf16.mxu0 %v692_v0 }
  0x49   :  { %510 = vmatpush3.bf16.msra.mxu1 %v573_v9 }
  0x4a   :  { %511 = vmatprep.subr.bf16.mxu1 %v692_v0  ;;  %528 = vmatpush3.bf16.msra.mxu0 %v580_v16 }
  0x4b   :  { %529 = vmatprep.subr.bf16.mxu0 %v692_v0 }
  0x4d   :  { %512 = vmatpush3.bf16.msra.mxu1 %v574_v10 }
  0x4e   :  { %513 = vmatprep.subr.bf16.mxu1 %v692_v0  ;;  %530 = vmatpush3.bf16.msra.mxu0 %v581_v17 }
  0x4f   :  { %531 = vmatprep.subr.bf16.mxu0 %v692_v0 }
  0x51   :  { %514 = vmatpush3.bf16.msra.mxu1 %v575_v11 }
  0x52   :  { %515 = vmatprep.subr.bf16.mxu1 %v692_v0  ;;  %532 = vmatpush3.bf16.msra.mxu0 %v582_v18 }
  0x53   :  { %533 = vmatprep.subr.bf16.mxu0 %v692_v0 }
  0x55   :  { %516 = vmatpush3.bf16.msra.mxu1 %v576_v12 }
  0x56   :  { %541 = vmatprep.subr.bf16.mxu1 %v692_v0  ;;  %534 = vmatpush3.bf16.msra.mxu0 %v583_v19 }
  0x57   :  { %535 = vmatprep.subr.bf16.mxu0 %v692_v0 }
  0x5a   :  { %536 = vmatpush3.bf16.msra.mxu0 %v584_v26 }
 0x10f   :  { %v98_v20 = vpop.f32.mrb[0].mxu0 }
 0x110   :  { %v104_v21 = vmax.f32 %v98_v20, 0.0  ;;  %v499_v22 = vpop.f32.mrb[1].mxu0 }
 0x111   :  { %v101_v23 = vpop.f32.mrb[2].mxu0 }
 0x112   :  { %v105_v24 = vpack.c.bf16 %v104_v21, %v104_v21  ;;  %v500_v25 = vpop.f32.mrb[3].mxu0 }
 0x114   :  { %518 = vmatmul.mubr.bf16.vlgmr.msra.gmra.mrb[0].mxu1 %v105_v24 }
 0x115   :  { %557 = vmatprep.mubr.msk.bf16.mxu1 %vm693_vm0, %v692_v0  ;;  %542 = vmatpush3.bf16.msra.mxu1 %v585_v27 }
 0x116   :  { %543 = vmatprep.subr.bf16.mxu1 %v692_v0 }
 0x119   :  { %544 = vmatpush3.bf16.msra.mxu1 %v586_v28 }
 0x11a   :  { %545 = vmatprep.subr.bf16.mxu1 %v692_v0 }
 0x11d   :  { %546 = vmatpush3.bf16.msra.mxu1 %v587_v29 }
 0x11e   :  { %547 = vmatprep.subr.bf16.mxu1 %v692_v0 }
 0x121   :  { %548 = vmatpush3.bf16.msra.mxu1 %v588_v30 }
 0x122   :  { %549 = vmatprep.subr.bf16.mxu1 %v692_v0 }
 0x125   :  { %550 = vmatpush3.bf16.msra.mxu1 %v589_v31 }
 0x126   :  { %551 = vmatprep.subr.bf16.mxu1 %v692_v0 }
 0x129   :  { %552 = vmatpush3.bf16.msra.mxu1 %v590_v32 }
 0x12a   :  { %553 = vmatprep.subr.bf16.mxu1 %v692_v0 }
 0x12d   :  { %554 = vmatpush3.bf16.msra.mxu1 %v591_v33 }
 0x12e   :  { %555 = vmatprep.subr.bf16.mxu1 %v692_v0 }
 0x131   :  { %556 = vmatpush3.bf16.msra.mxu1 %v592_v40 }
 0x1e7   :  { %v204_v34 = vpop.f32.mrb[0].mxu1 }
 0x1e8   :  { %v210_v35 = vmax.f32 %v204_v34, 0.0  ;;  %v519_v36 = vpop.f32.mrb[1].mxu1 }
 0x1e9   :  { %v207_v37 = vpop.f32.mrb[2].mxu1 }
 0x1ea   :  { %v211_v38 = vpack.c.bf16 %v210_v35, %v210_v35  ;;  %v520_v39 = vpop.f32.mrb[3].mxu1 }
 0x1ec   :  { %538 = vmatmul.mubr.bf16.vlgmr.msra.gmra.mrb[4].mxu0 %v211_v38 }
 0x2bf   :  { %v311_v41 = vpop.f32.mrb[4].mxu0 }
 0x2c0   :  { %v317_v42 = vmax.f32 %v311_v41, 0.0  ;;  %v539_v43 = vpop.f32.mrb[5].mxu0 }
 0x2c1   :  { %v314_v44 = vpop.f32.mrb[6].mxu0 }
 0x2c2   :  { %v318_v45 = vpack.c.bf16 %v317_v42, %v317_v42  ;;  %v540_v46 = vpop.f32.mrb[7].mxu0 }
 0x2c4   :  { %558 = vmatmul.mubr.bf16.vlgmr.msra.gmra.mrb[4].mxu1 %v318_v45 }
 0x397   :  { %v418_v47 = vpop.f32.mrb[4].mxu1 }
 0x398   :  { %424 = vst.msk [vmem:[#allocation8] sm:$0xff] %vm56_vm2, %v418_v47  ;;  %v559_v48 = vpop.f32.mrb[5].mxu1 }
 0x399   :  { %v421_v49 = vpop.f32.mrb[6].mxu1 }
 0x39a   :  { %670 = shalt.err (!%p667_p0)
}
 0x39b   :  { %s671_s25 = scalar_lea.hbm %s801_s3, 128 }
 0x39c   :  { %p672_p1 = scmp.ne.s32.totalorder %s801_s3, %s671_s25  ;;  %p675_p2 = scmp.lt.u32.totalorder %s671_s25, %s801_s3 }
 0x39e   :  { %p677_p3 = pnand %p675_p2, %p672_p1 }
 0x3a0   :  { %680 = shalt.err (!%p677_p3)
}
 0x3a1   :  { %434 = dma.vmem_to_hbm [thread:$0]  %s432_s21, 128, %s801_s3, [#allocation4]   ;;  %v560_v50 = vpop.f32.mrb[7].mxu1 }
 0x3a2   :  { %685 = dma.done.wait [#allocation4], 128  }
 0x3a3   :  { %686 = vsyncadd [#allocation4], 4294967168 }
 0x3a4   :  { %438 = vsyncpa [#allocation3], 1 }
 0x3a5   :  { %439 = vsyncpa [#allocation6], 1 }
 0x3a6   :  { %440 = vsyncpa [#allocation4], 1 }

</bundles_post_ra>
